<compile_context>
chip_gen: v5e
topology: v5e:2x2
jax: 0.10.0
libtpu: 0.0.40
codegen_flags: <defaults>
</compile_context>

<pallas_src>
import jax
import jax.numpy as jnp
from jax.experimental import pallas as pl
from jax.experimental.pallas import tpu as pltpu


# ---------------------------------------------------------------------------
# Kernels
# ---------------------------------------------------------------------------
def _log_softmax_rows(logits):
    # Numerically stable LogSoftmax along the last axis (rows are independent,
    # so garbage rows of a ragged last block cannot contaminate valid rows).
    m = jnp.max(logits, axis=-1, keepdims=True)
    shifted = logits - m
    lse = jnp.log(jnp.sum(jnp.exp(shifted), axis=-1, keepdims=True))
    return shifted - lse


def _fused_kernel(x_ref, w_ref, b_ref, o_ref):
    # Single MXU pass: x @ (W1 @ W2) + (b1 @ W2 + b2), then LogSoftmax.
    logits = (
        jnp.dot(x_ref[...], w_ref[...], preferred_element_type=jnp.float32)
        + b_ref[...]
    )
    o_ref[...] = _log_softmax_rows(logits).astype(o_ref.dtype)


def _rank2_kernel(x_ref, w1_ref, b1_ref, w2_ref, b2_ref, o_ref):
    # Fallback when the fused (D, O) weight would be too big to keep resident
    # in VMEM (e.g. large input_size x output_size on v7x's 64 MiB VMEM).
    h = (
        jnp.dot(x_ref[...], w1_ref[...], preferred_element_type=jnp.float32)
        + b1_ref[...]
    )
    logits = (
        jnp.dot(h, w2_ref[...], preferred_element_type=jnp.float32)
        + b2_ref[...]
    )
    o_ref[...] = _log_softmax_rows(logits).astype(o_ref.dtype)


# ---------------------------------------------------------------------------
# Tiling / wrapper
# ---------------------------------------------------------------------------
_TARGET_TILE_BYTES = 2 << 20   # aim for ~2 MiB of x per grid step
_VMEM_BUDGET_BYTES = 12 << 20  # stays under v5e's 16 MiB default scoped VMEM
_FOLD_WEIGHT_LIMIT = 4 << 20   # only fold W1@W2 if the resident weight is small


def _round_up(x, m):
    return -(-x // m) * m


def _choose_tile_b(B, D, O, resident_bytes):
    """Pick the batch tile: byte-targeted, VMEM-capped, megacore-friendly."""
    lane_o = _round_up(max(O, 1), 128)  # out tile is lane-padded to 128 in VMEM

    # Target ~2 MiB of x per grid step (at least 512 rows).
    tb = max(512, _round_up(_TARGET_TILE_BYTES // (4 * D), 8))

    # VMEM cap: double-buffered x tile + double-buffered (lane-padded) out tile
    # on top of the resident weights/bias.
    per_row = 4 * (2 * D + 2 * lane_o)
    avail = max(_VMEM_BUDGET_BYTES - resident_bytes, per_row * 8)
    tb = min(tb, max(8, (avail // per_row) // 8 * 8))

    # v7x megacore: keep >= 2 grid steps for big batches so both TCs get work.
    if B >= 2048:
        tb = min(tb, _round_up(pl.cdiv(B, 2), 8))

    if tb >= B:
        return B  # single exact block (block_shape == full array dims)
    return tb     # multiple of 8; ragged last block handled by Pallas masking


def model_forward(x, w1, b1, w2, b2):
    """x: (B, input_size); w1: (input_size, 2); b1: (1, 2);
    w2: (2, output_size); b2: (1, output_size). Returns (B, output_size)."""
    x = x.astype(jnp.float32)
    B, D = x.shape
    O = w2.shape[1]
    lane_o = _round_up(O, 128)

    compiler_params = pltpu.CompilerParams(
        dimension_semantics=("parallel",),  # shard grid steps across TCs on v7x
    )

    # Gate the exact rank-2 fold by the VMEM footprint of the fused weight.
    fuse = 2 * (_round_up(D, 8) * lane_o * 4) <= _FOLD_WEIGHT_LIMIT

    if fuse:
        # Exact fold: no nonlinearity between the two Linears.
        w_eff = jnp.dot(w1, w2, preferred_element_type=jnp.float32)       # (D, O)
        b_eff = jnp.dot(b1, w2, preferred_element_type=jnp.float32) + b2  # (1, O)

        resident = 2 * 4 * (_round_up(D, 8) * lane_o + 8 * lane_o)
        tb = _choose_tile_b(B, D, O, resident)
        grid = (pl.cdiv(B, tb),)

        cost = pl.CostEstimate(
            flops=2 * B * D * O,
            transcendentals=B * O,
            bytes_accessed=4 * (B * D + D * O + B * O),
        )

        return pl.pallas_call(
            _fused_kernel,
            out_shape=jax.ShapeDtypeStruct((B, O), jnp.float32),
            grid=grid,
            in_specs=[
                pl.BlockSpec((tb, D), lambda i: (i, 0)),   # streamed x tile
                pl.BlockSpec((D, O), lambda i: (0, 0)),    # resident fused weight
                pl.BlockSpec((1, O), lambda i: (0, 0)),    # resident fused bias
            ],
            out_specs=pl.BlockSpec((tb, O), lambda i: (i, 0)),
            compiler_params=compiler_params,
            cost_estimate=cost,
        )(x, w_eff, b_eff)

    # Rank-2 fallback: keep the tiny (D, 2) and (2, O) weights resident instead
    # of materializing a D x O fused weight that may not fit VMEM.
    resident = 2 * 4 * (_round_up(D, 8) * 128 + 8 * 128 + 8 * lane_o + 8 * lane_o)
    tb = _choose_tile_b(B, D, O, resident)
    grid = (pl.cdiv(B, tb),)

    cost = pl.CostEstimate(
        flops=2 * B * D * 2 + 2 * B * 2 * O,
        transcendentals=B * O,
        bytes_accessed=4 * (B * D + D * 2 + 2 * O + B * O),
    )

    return pl.pallas_call(
        _rank2_kernel,
        out_shape=jax.ShapeDtypeStruct((B, O), jnp.float32),
        grid=grid,
        in_specs=[
            pl.BlockSpec((tb, D), lambda i: (i, 0)),   # streamed x tile
            pl.BlockSpec((D, 2), lambda i: (0, 0)),    # resident W1
            pl.BlockSpec((1, 2), lambda i: (0, 0)),    # resident b1
            pl.BlockSpec((2, O), lambda i: (0, 0)),    # resident W2
            pl.BlockSpec((1, O), lambda i: (0, 0)),    # resident b2
        ],
        out_specs=pl.BlockSpec((tb, O), lambda i: (i, 0)),
        compiler_params=compiler_params,
        cost_estimate=cost,
    )(x, w1, b1, w2, b2)


# ---------------------------------------------------------------------------
# Params / reference / test
# ---------------------------------------------------------------------------
def init_params(key, input_size, output_size):
    # Deterministic init mimicking nn.Linear's U(-1/sqrt(fan_in), 1/sqrt(fan_in)).
    k1, k2, k3, k4 = jax.random.split(key, 4)
    lim1 = 1.0 / jnp.sqrt(jnp.float32(input_size))
    lim2 = 1.0 / jnp.sqrt(jnp.float32(2))
    w1 = jax.random.uniform(k1, (input_size, 2), jnp.float32, -lim1, lim1)
    b1 = jax.random.uniform(k2, (1, 2), jnp.float32, -lim1, lim1)
    w2 = jax.random.uniform(k3, (2, output_size), jnp.float32, -lim2, lim2)
    b2 = jax.random.uniform(k4, (1, output_size), jnp.float32, -lim2, lim2)
    return w1, b1, w2, b2


def _reference(x, w1, b1, w2, b2):
    logits = (x @ w1 + b1) @ w2 + b2
    return jax.nn.log_softmax(logits, axis=1)


if __name__ == "__main__":
    input_size, output_size = 32, 16
    key = jax.random.PRNGKey(0)
    kx, kp, kx2 = jax.random.split(key, 3)
    w1, b1, w2, b2 = init_params(kp, input_size, output_size)

    # Small, single-block case (matches the module's expected small shapes).
    batch = 8
    x = jax.random.normal(kx, (batch, input_size), jnp.float32)
    out = model_forward(x, w1, b1, w2, b2)
    jax.block_until_ready(out)
    ref = _reference(x, w1, b1, w2, b2)
    assert out.shape == (batch, output_size)
    assert jnp.allclose(out, ref, atol=1e-5, rtol=1e-5), "mismatch (small batch)"

    # Larger, ragged multi-step case (exercises cdiv grid + masked last block
    # and the megacore-friendly tile split).
    batch2 = 4099
    x2 = jax.random.normal(kx2, (batch2, input_size), jnp.float32)
    out2 = model_forward(x2, w1, b1, w2, b2)
    jax.block_until_ready(out2)
    ref2 = _reference(x2, w1, b1, w2, b2)
    assert out2.shape == (batch2, output_size)
    assert jnp.allclose(out2, ref2, atol=1e-5, rtol=1e-5), "mismatch (ragged batch)"

    print("KERNEL_OK")
</pallas_src>

<mosaic_0001>
module attributes {stable_mosaic.version = 11 : i64} {
  func.func @_fused_kernel(%arg0: i32, %arg1: memref<8x32xf32, #tpu.memory_space<vmem>>, %arg2: memref<32x16xf32, #tpu.memory_space<vmem>>, %arg3: memref<1x16xf32, #tpu.memory_space<vmem>>, %arg4: memref<8x16xf32, #tpu.memory_space<vmem>>) attributes {dimension_semantics = [#tpu.dimension_semantics<parallel>], iteration_bounds = array<i64: 1>, scalar_prefetch = 0 : i64, scratch_operands = 0 : i64, tpu.core_type = #tpu.core_type<tc>, window_params = [{transform_indices = @transform_0, window_bounds = array<i64: 8, 32>}, {pipeline_mode = #tpu.pipeline_mode<synchronous>, transform_indices = @transform_1, window_bounds = array<i64: 32, 16>}, {pipeline_mode = #tpu.pipeline_mode<synchronous>, transform_indices = @transform_2, window_bounds = array<i64: 1, 16>}, {transform_indices = @transform_3, window_bounds = array<i64: 8, 16>}]} {
    %c0 = arith.constant 0 : index
    %c0_0 = arith.constant 0 : index
    %0 = vector.load %arg1[%c0, %c0_0] : memref<8x32xf32, #tpu.memory_space<vmem>>, vector<8x32xf32>
    %c0_1 = arith.constant 0 : index
    %c0_2 = arith.constant 0 : index
    %1 = vector.load %arg2[%c0_1, %c0_2] : memref<32x16xf32, #tpu.memory_space<vmem>>, vector<32x16xf32>
    %cst = arith.constant dense<0.000000e+00> : vector<8x16xf32>
    %2 = tpu.matmul %0, %1, %cst {dimension_numbers = #tpu.dot_dimension_numbers<[1], [0], [0], [1], [0, 0, 1, 1], [], []>} : vector<8x32xf32>, vector<32x16xf32>, vector<8x16xf32> -> vector<8x16xf32>
    %c0_3 = arith.constant 0 : index
    %c0_4 = arith.constant 0 : index
    %3 = vector.load %arg3[%c0_3, %c0_4] : memref<1x16xf32, #tpu.memory_space<vmem>>, vector<1x16xf32>
    %4 = vector.broadcast %3 : vector<1x16xf32> to vector<8x16xf32>
    %5 = arith.addf %2, %4 : vector<8x16xf32>
    %cst_5 = arith.constant dense<0xFF800000> : vector<8xf32>
    %6 = vector.multi_reduction <maximumf>, %5, %cst_5 [1] : vector<8x16xf32> to vector<8xf32>
    %7 = vector.shape_cast %6 : vector<8xf32> to vector<8x1xf32>
    %8 = vector.broadcast %7 : vector<8x1xf32> to vector<8x16xf32>
    %9 = arith.subf %5, %8 : vector<8x16xf32>
    %10 = math.exp %9 : vector<8x16xf32>
    %cst_6 = arith.constant dense<0.000000e+00> : vector<8xf32>
    %11 = vector.multi_reduction <add>, %10, %cst_6 [1] : vector<8x16xf32> to vector<8xf32>
    %12 = vector.shape_cast %11 : vector<8xf32> to vector<8x1xf32>
    %13 = math.log %12 : vector<8x1xf32>
    %14 = vector.broadcast %13 : vector<8x1xf32> to vector<8x16xf32>
    %15 = arith.subf %9, %14 : vector<8x16xf32>
    %c0_7 = arith.constant 0 : index
    %c0_8 = arith.constant 0 : index
    %16 = vector.load %arg4[%c0_7, %c0_8] : memref<8x16xf32, #tpu.memory_space<vmem>>, vector<8x16xf32>
    tpu.vector_store %arg4[%c0_7, %c0_8], %15 {strides = array<i32>} : memref<8x16xf32, #tpu.memory_space<vmem>>, vector<8x16xf32>,
    return
  }
  func.func @transform_0(%arg0: i32) -> (i32, i32) {
    %c0_i32 = arith.constant 0 : i32
    %c0_i32_0 = arith.constant 0 : i32
    return %arg0, %c0_i32 : i32, i32
  }
  func.func @transform_1(%arg0: i32) -> (i32, i32) {
    %c0_i32 = arith.constant 0 : i32
    %c0_i32_0 = arith.constant 0 : i32
    %c0_i32_1 = arith.constant 0 : i32
    return %c0_i32, %c0_i32_0 : i32, i32
  }
  func.func @transform_2(%arg0: i32) -> (i32, i32) {
    %c0_i32 = arith.constant 0 : i32
    %c0_i32_0 = arith.constant 0 : i32
    %c0_i32_1 = arith.constant 0 : i32
    return %c0_i32, %c0_i32_0 : i32, i32
  }
  func.func @transform_3(%arg0: i32) -> (i32, i32) {
    %c0_i32 = arith.constant 0 : i32
    %c0_i32_0 = arith.constant 0 : i32
    return %arg0, %c0_i32 : i32, i32
  }
}

</mosaic_0001>

<bundles_post_ra>
// kernel: tpu_custom_call.1
= control target key start
LH: loop header
LB: loop body
LE: loop exit
PB: predicated region body
PF: predicated region fallthrough
CT: control target
= control target key end

     0   :  { %s156_s0 = inlined_call_operand.vmem [shape: f32[8,32], index: 0, kind: input, shape index: {}]   ;;  %s157_s1 = inlined_call_operand.vmem [shape: f32[32,16], index: 1, kind: input, shape index: {}]   ;;  %s158_s2 = inlined_call_operand.vmem [shape: f32[1,16], index: 2, kind: input, shape index: {}]   ;;  %s159_s3 = inlined_call_operand.hbm [shape: f32[8,16], index: 3, kind: output, shape index: {}]  }
   0x1   :  { %v19_v0 = vld [vmem:[%s157_s1 + $0x18] sm:$0xff]  ;;  %v18_v1 = vld [vmem:[%s157_s1 + $0x10] sm:$0xff]  ;;  %v17_v2 = vld [vmem:[%s157_s1 + $0x8] sm:$0xff] }
   0x2   :  { %40 = vmatpush.msra.mxu0 %v19_v0 }
   0x3   :  { %8 = vsyncpa [#allocation3], 0  ;;  %v16_v3 = vld [vmem:[%s157_s1] sm:$0xff]  ;;  %vm24_vm0 = vcmask 261120   ;;  %vm48_vm1 = vcmask 130048   ;;  %s69_s25 = sshll.u32 %s159_s3, 4  ;;  %s70_s25 = int_to_ptr.hbm [resolvable:$true] %s69_s25 }
   0x4   :  { %41 = vmatpush.msra.mxu0 %v18_v1  ;;  %v15_v4 = vld [vmem:[%s156_s0] sm:$0xff]  ;;  %s111_s0 = smov [#allocation2]  }
   0x5   :  { %v80_v5 = vld [vmem:[%s158_s2] ss:$0 sm:$0xff]  ;;  %s67_s1 = sshll.u32 %s111_s0, 4  ;;  %s68_s1 = int_to_ptr.vmem [resolvable:$true] %s67_s1 }
   0x6   :  { %42 = vmatpush.msra.mxu0 %v17_v2 }
   0x8   :  { %43 = vmatpush.msra.mxu0 %v16_v3 }
   0x9   :  { %78 = vmatmul.msk.f32.vlgmr.msra.gmra.mxu0 %vm24_vm0, %v15_v4 }
  0x86   :  { %v45_v6 = vpop.f32.mrf.mxu0 }
  0x87   :  { %v46_v7 = vadd.f32 %v80_v5, %v45_v6 }
  0x89   :  { %v49_v8 = vsel %vm48_vm1, %v46_v7, -inf }
  0x8a   :  { %50 = vmax.xlane.f32.xlu0 %v49_v8 }
  0xfd   :  { %v51_v9 = vpop.xlane.xlu0 %50 }
  0xfe   :  { %v52_v10 = vsub.f32 %v46_v7, %v51_v9 }
 0x100   :  { %v53_v11 = vmul.f32 1.442695, %v52_v10 }
 0x102   :  { %81 = vpow2.f32 %v53_v11 }
 0x108   :  { %v82_v12 = vpop.eup %81 }
 0x109   :  { %v55_v13 = vsel %vm48_vm1, %v82_v12, 0.0 }
 0x10a   :  { %56 = vadd.xlane.f32.xlu0 %v55_v13 }
 0x17d   :  { %v57_v14 = vpop.xlane.xlu0 %56 }
 0x17e   :  { %83 = vlog2.f32 %v57_v14 }
 0x184   :  { %v84_v15 = vpop.eup %83 }
 0x185   :  { %v59_v16 = vmul.f32 0.6931472, %v84_v15 }
 0x187   :  { %v60_v17 = vsub.f32 %v52_v10, %v59_v16 }
 0x189   :  { %61 = vst.msk [vmem:[#allocation2] sm:$0xff] %vm48_vm1, %v60_v17 }
 0x18a   :  { %72 = dma.vmem_to_hbm [thread:$0]  %s68_s1, 128, %s70_s25, [#allocation3]  }
 0x18b   :  { %109 = dma.done.wait [#allocation3], 128  }
 0x18c   :  { %110 = vsyncadd [#allocation3], 4294967168 }
 0x18d   :  { %77 = vsyncpa [#allocation3], 1 }

</bundles_post_ra>
